<compile_context>
chip_gen: v5e
topology: v5e:2x2
jax: 0.10.0
libtpu: 0.0.40
codegen_flags: <defaults>
</compile_context>

<pallas_src>
import functools

import jax
import jax.numpy as jnp
from jax import lax
from jax.experimental import pallas as pl
from jax.experimental.pallas import tpu as pltpu


# ---------------------------------------------------------------------------
# Tiling helpers
# ---------------------------------------------------------------------------
def _pick_tile(dim, preferred, aligns=(128, 8)):
    """Largest tile <= preferred that divides `dim`, preferring the alignment
    steps in `aligns` (tried in order); falls back to the full dimension
    (always a legal block)."""
    if dim <= preferred:
        return dim
    for step in aligns:
        t = (preferred // step) * step
        while t >= step:
            if dim % t == 0:
                return t
            t -= step
    return dim


# ---------------------------------------------------------------------------
# Projection kernel:  y = x @ W^T   (W^T pre-transposed in the wrapper)
# ---------------------------------------------------------------------------
def _linear_kernel(x_ref, wt_ref, o_ref):
    o_ref[...] = jnp.dot(
        x_ref[...], wt_ref[...], preferred_element_type=jnp.float32
    ).astype(o_ref.dtype)


def _linear_pallas(x, w_t, out_dtype, *, block_rows=512, block_cols=512):
    s, din = x.shape
    dout = w_t.shape[1]
    sub = 16 if x.dtype == jnp.bfloat16 else 8
    tm = _pick_tile(s, block_rows, (128, sub))
    # Column-tile the weight so each VMEM weight buffer is at most (din, 512):
    # keeps the resident/double-buffered weight within v7x's smaller VMEM.
    tn = _pick_tile(dout, block_cols, (128,))
    return pl.pallas_call(
        _linear_kernel,
        out_shape=jax.ShapeDtypeStruct((s, dout), out_dtype),
        grid_spec=pltpu.PrefetchScalarGridSpec(
            num_scalar_prefetch=0,
            grid=(s // tm, dout // tn),
            in_specs=[
                pl.BlockSpec((tm, din), lambda i, j: (i, 0)),
                pl.BlockSpec((din, tn), lambda i, j: (0, j)),
            ],
            out_specs=pl.BlockSpec((tm, tn), lambda i, j: (i, j)),
        ),
        compiler_params=pltpu.CompilerParams(
            dimension_semantics=("parallel", "parallel")),
    )(x, w_t)


# ---------------------------------------------------------------------------
# Flash-style attention kernels with online softmax
# ---------------------------------------------------------------------------
def _online_softmax_step(q_ref, k_ref, v_ref, mask_ref, m_scr, l_scr, acc_scr):
    # scores = q @ k^T without an in-kernel transpose: contract the last dims.
    # The 1/sqrt(d_model) scale is already folded into W_q.
    s = lax.dot_general(
        q_ref[...], k_ref[...], (((1,), (1,)), ((), ())),
        preferred_element_type=jnp.float32)
    if mask_ref is not None:
        # masked_fill(mask, -1e9); mask is int8 (0 = keep, nonzero = mask).
        s = jnp.where(mask_ref[...] != 0, jnp.float32(-1e9), s)

    m_prev = m_scr[...]
    m_new = jnp.maximum(m_prev, jnp.max(s, axis=-1, keepdims=True))
    alpha = jnp.exp(m_prev - m_new)
    p = jnp.exp(s - m_new)
    l_scr[...] = alpha * l_scr[...] + jnp.sum(p, axis=-1, keepdims=True)
    acc_scr[...] = alpha * acc_scr[...] + jnp.dot(
        p.astype(v_ref.dtype), v_ref[...], preferred_element_type=jnp.float32)
    m_scr[...] = m_new


def _flash_attn_kernel(q_ref, k_ref, v_ref, o_ref, m_scr, l_scr, acc_scr):
    kv = pl.program_id(1)

    @pl.when(kv == 0)
    def _():
        m_scr[...] = jnp.full_like(m_scr, -jnp.inf)
        l_scr[...] = jnp.zeros_like(l_scr)
        acc_scr[...] = jnp.zeros_like(acc_scr)

    _online_softmax_step(q_ref, k_ref, v_ref, None, m_scr, l_scr, acc_scr)

    @pl.when(kv == pl.num_programs(1) - 1)
    def _():
        o_ref[...] = (acc_scr[...] *
                      pl.reciprocal(l_scr[...], approx=True)).astype(o_ref.dtype)


def _flash_attn_kernel_masked(active_ref, q_ref, k_ref, v_ref, mask_ref, o_ref,
                              m_scr, l_scr, acc_scr):
    qi = pl.program_id(0)
    kv = pl.program_id(1)

    # Init / finalize run unconditionally; only the compute core is gated on
    # the prefetched per-block activity flag (fully-masked blocks are skipped).
    @pl.when(kv == 0)
    def _():
        m_scr[...] = jnp.full_like(m_scr, -jnp.inf)
        l_scr[...] = jnp.zeros_like(l_scr)
        acc_scr[...] = jnp.zeros_like(acc_scr)

    @pl.when(active_ref[qi, kv] != 0)
    def _():
        _online_softmax_step(q_ref, k_ref, v_ref, mask_ref,
                             m_scr, l_scr, acc_scr)

    @pl.when(kv == pl.num_programs(1) - 1)
    def _():
        o_ref[...] = (acc_scr[...] *
                      pl.reciprocal(l_scr[...], approx=True)).astype(o_ref.dtype)


# ---------------------------------------------------------------------------
# Wrapper (matches Attention.forward: row_dim=0, col_dim=1, nn.Linear no bias)
# ---------------------------------------------------------------------------
def attention_pallas(enc_q, enc_k, enc_v, w_q, w_k, w_v, mask=None, *,
                     block_q=512, block_kv=256, mxu_dtype=jnp.bfloat16):
    """enc_q: (Sq, D); enc_k/enc_v: (Sk, D); w_*: (D, D) torch Linear weights
    (out_features, in_features); mask: optional (Sq, Sk), True/nonzero -> -1e9.

    Note: mxu_dtype defaults to bf16 (MXU-native on v5e/v6e/v7x, f32
    accumulation); expect bf16-level tolerances. Pass jnp.float32 for exact-ish
    numerics."""
    Sq, D = enc_q.shape
    Sk, _ = enc_k.shape
    scale = 1.0 / (float(D) ** 0.5)   # == k.size(col_dim) ** 0.5

    # One-time wrapper-side layout plumbing: transpose weights, fold the scale.
    wq_t = (w_q * scale).T
    wk_t = w_k.T
    wv_t = w_v.T

    # Lane-dense padding of d_model to a multiple of 128 (exact zeros).
    Dp = pl.cdiv(D, 128) * 128
    if Dp != D:
        pad_cols = ((0, 0), (0, Dp - D))
        pad_both = ((0, Dp - D), (0, Dp - D))
        enc_q = jnp.pad(enc_q, pad_cols)
        enc_k = jnp.pad(enc_k, pad_cols)
        enc_v = jnp.pad(enc_v, pad_cols)
        wq_t = jnp.pad(wq_t, pad_both)
        wk_t = jnp.pad(wk_t, pad_both)
        wv_t = jnp.pad(wv_t, pad_both)

    # bf16 MXU operands by default (accumulation stays f32 inside the kernels).
    enc_q = enc_q.astype(mxu_dtype)
    enc_k = enc_k.astype(mxu_dtype)
    enc_v = enc_v.astype(mxu_dtype)
    wq_t = wq_t.astype(mxu_dtype)
    wk_t = wk_t.astype(mxu_dtype)
    wv_t = wv_t.astype(mxu_dtype)

    # Hoisted projections: computed once, never recomputed per q-tile.
    # TODO(synk): optionally fuse the Q projection into the flash kernel to
    # save one HBM round trip for q on short sequences.
    q = _linear_pallas(enc_q, wq_t, mxu_dtype)
    k = _linear_pallas(enc_k, wk_t, mxu_dtype)
    v = _linear_pallas(enc_v, wv_t, mxu_dtype)

    has_mask = mask is not None
    sub = 16 if mxu_dtype == jnp.bfloat16 else 8
    # Keep >= 2 q tiles when the sequence allows it so the "parallel" q axis
    # can still shard across both TensorCores on v7x.
    q_pref = min(block_q, max(Sq // 2, 128)) if Sq >= 256 else block_q
    q_aligns = (128, 32, sub) if has_mask else (128, sub)   # 32: int8 sublane
    tq = _pick_tile(Sq, q_pref, q_aligns)
    tk = _pick_tile(Sk, block_kv, (128,))
    nq, nk = Sq // tq, Sk // tk
    grid = (nq, nk)

    out_shape = jax.ShapeDtypeStruct((Sq, Dp), jnp.float32)
    scratch_shapes = [
        pltpu.VMEM((tq, 1), jnp.float32),    # running max  m
        pltpu.VMEM((tq, 1), jnp.float32),    # running sum  l
        pltpu.VMEM((tq, Dp), jnp.float32),   # running num  acc
    ]
    compiler_params = pltpu.CompilerParams(
        dimension_semantics=("parallel", "arbitrary"))

    if not has_mask:
        out = pl.pallas_call(
            _flash_attn_kernel,
            out_shape=out_shape,
            grid_spec=pltpu.PrefetchScalarGridSpec(
                num_scalar_prefetch=0,
                grid=grid,
                in_specs=[
                    pl.BlockSpec((tq, Dp), lambda qi, ki: (qi, 0)),
                    pl.BlockSpec((tk, Dp), lambda qi, ki: (ki, 0)),
                    pl.BlockSpec((tk, Dp), lambda qi, ki: (ki, 0)),
                ],
                out_specs=pl.BlockSpec((tq, Dp), lambda qi, ki: (qi, 0)),
                scratch_shapes=scratch_shapes),
            compiler_params=compiler_params,
        )(q, k, v)
    else:
        mask_bool = mask.astype(bool)
        mask_i8 = mask_bool.astype(jnp.int8)   # 4x less HBM than int32
        # Per-(q_tile, kv_tile) activity: skip blocks that are fully masked.
        blk = mask_bool.reshape(nq, tq, nk, tk)
        fully_masked = jnp.all(blk, axis=(1, 3))            # (nq, nk)
        active = ~fully_masked
        # Pathological fully-masked q tiles: keep every block active so the
        # output degrades to uniform attention exactly like the reference.
        row_has_active = jnp.any(active, axis=1, keepdims=True)
        active = jnp.where(row_has_active, active, True).astype(jnp.int32)

        out = pl.pallas_call(
            _flash_attn_kernel_masked,
            out_shape=out_shape,
            grid_spec=pltpu.PrefetchScalarGridSpec(
                num_scalar_prefetch=1,
                grid=grid,
                in_specs=[
                    pl.BlockSpec((tq, Dp), lambda qi, ki, act: (qi, 0)),
                    pl.BlockSpec((tk, Dp), lambda qi, ki, act: (ki, 0)),
                    pl.BlockSpec((tk, Dp), lambda qi, ki, act: (ki, 0)),
                    pl.BlockSpec((tq, tk), lambda qi, ki, act: (qi, ki)),
                ],
                out_specs=pl.BlockSpec((tq, Dp), lambda qi, ki, act: (qi, 0)),
                scratch_shapes=scratch_shapes),
            compiler_params=compiler_params,
        )(active, q, k, v, mask_i8)

    return out[:, :D] if Dp != D else out


# ---------------------------------------------------------------------------
# Pure-JAX reference (mirrors the PyTorch module)
# ---------------------------------------------------------------------------
def attention_ref(enc_q, enc_k, enc_v, w_q, w_k, w_v, mask=None):
    q = enc_q @ w_q.T
    k = enc_k @ w_k.T
    v = enc_v @ w_v.T
    sims = q @ k.T
    scaled = sims / jnp.sqrt(jnp.float32(k.shape[1]))
    if mask is not None:
        scaled = jnp.where(mask, jnp.float32(-1e9), scaled)
    p = jax.nn.softmax(scaled, axis=1)
    return p @ v


if __name__ == "__main__":
    def make_case(key, seq, d_model):
        k0, k1, k2, k3, k4, k5 = jax.random.split(key, 6)
        enc_q = jax.random.normal(k0, (seq, d_model), dtype=jnp.float32)
        enc_k = jax.random.normal(k1, (seq, d_model), dtype=jnp.float32)
        enc_v = jax.random.normal(k2, (seq, d_model), dtype=jnp.float32)
        w_q = jax.random.normal(k3, (d_model, d_model), dtype=jnp.float32) * 0.1
        w_k = jax.random.normal(k4, (d_model, d_model), dtype=jnp.float32) * 0.1
        w_v = jax.random.normal(k5, (d_model, d_model), dtype=jnp.float32) * 0.1
        return enc_q, enc_k, enc_v, w_q, w_k, w_v

    def check(seq, d_model, key, *, causal, mxu_dtype, atol, rtol):
        enc_q, enc_k, enc_v, w_q, w_k, w_v = make_case(key, seq, d_model)
        mask = (jnp.triu(jnp.ones((seq, seq), dtype=bool), k=1)
                if causal else None)
        out = jax.block_until_ready(
            attention_pallas(enc_q, enc_k, enc_v, w_q, w_k, w_v, mask,
                             mxu_dtype=mxu_dtype))
        ref = attention_ref(enc_q, enc_k, enc_v, w_q, w_k, w_v, mask)
        assert out.shape == (seq, d_model)
        assert jnp.allclose(out, ref, atol=atol, rtol=rtol), (
            f"mismatch seq={seq} d={d_model} causal={causal} "
            f"dtype={mxu_dtype}")

    key0 = jax.random.PRNGKey(0)
    key1 = jax.random.PRNGKey(1)

    # --- Case 1: small shapes (seq=8, d_model=32), f32 MXU (tight tolerance),
    #     mask + no-mask paths.
    check(8, 32, key0, causal=True, mxu_dtype=jnp.float32, atol=2e-3, rtol=2e-3)
    check(8, 32, key0, causal=False, mxu_dtype=jnp.float32, atol=2e-3, rtol=2e-3)

    # --- Case 2: same small shapes with the default bf16 MXU path
    #     (bf16 operands -> looser tolerance, accumulation stays f32).
    check(8, 32, key0, causal=True, mxu_dtype=jnp.bfloat16, atol=0.1, rtol=0.1)

    # --- Case 3: larger causal case exercising the tiled flash path
    #     (2x2 grid; the fully-masked (q_tile=0, kv_tile=1) block is skipped
    #     via the scalar-prefetched activity flags).
    check(512, 64, key1, causal=True, mxu_dtype=jnp.float32,
          atol=2e-3, rtol=2e-3)
    check(512, 64, key1, causal=True, mxu_dtype=jnp.bfloat16,
          atol=0.3, rtol=0.05)

    print("KERNEL_OK")
</pallas_src>

<mosaic_0001>
module attributes {stable_mosaic.version = 11 : i64} {
  func.func @_linear_kernel(%arg0: i32, %arg1: i32, %arg2: memref<8x128xf32, #tpu.memory_space<vmem>>, %arg3: memref<128x128xf32, #tpu.memory_space<vmem>>, %arg4: memref<8x128xf32, #tpu.memory_space<vmem>>) attributes {dimension_semantics = [#tpu.dimension_semantics<parallel>, #tpu.dimension_semantics<parallel>], iteration_bounds = array<i64: 1, 1>, scalar_prefetch = 0 : i64, scratch_operands = 0 : i64, tpu.core_type = #tpu.core_type<tc>, window_params = [{transform_indices = @transform_0, window_bounds = array<i64: 8, 128>}, {transform_indices = @transform_1, window_bounds = array<i64: 128, 128>}, {transform_indices = @transform_2, window_bounds = array<i64: 8, 128>}]} {
    %c0 = arith.constant 0 : index
    %c0_0 = arith.constant 0 : index
    %0 = vector.load %arg2[%c0, %c0_0] : memref<8x128xf32, #tpu.memory_space<vmem>>, vector<8x128xf32>
    %c0_1 = arith.constant 0 : index
    %c0_2 = arith.constant 0 : index
    %1 = vector.load %arg3[%c0_1, %c0_2] : memref<128x128xf32, #tpu.memory_space<vmem>>, vector<128x128xf32>
    %cst = arith.constant dense<0.000000e+00> : vector<8x128xf32>
    %2 = tpu.matmul %0, %1, %cst {dimension_numbers = #tpu.dot_dimension_numbers<[1], [0], [0], [1], [0, 0, 1, 1], [], []>} : vector<8x128xf32>, vector<128x128xf32>, vector<8x128xf32> -> vector<8x128xf32>
    %c0_3 = arith.constant 0 : index
    %c0_4 = arith.constant 0 : index
    %3 = vector.load %arg4[%c0_3, %c0_4] : memref<8x128xf32, #tpu.memory_space<vmem>>, vector<8x128xf32>
    tpu.vector_store %arg4[%c0_3, %c0_4], %2 {strides = array<i32>} : memref<8x128xf32, #tpu.memory_space<vmem>>, vector<8x128xf32>,
    return
  }
  func.func @transform_0(%arg0: i32, %arg1: i32) -> (i32, i32) {
    %c0_i32 = arith.constant 0 : i32
    %c0_i32_0 = arith.constant 0 : i32
    return %arg0, %c0_i32 : i32, i32
  }
  func.func @transform_1(%arg0: i32, %arg1: i32) -> (i32, i32) {
    %c0_i32 = arith.constant 0 : i32
    %c0_i32_0 = arith.constant 0 : i32
    return %c0_i32, %arg1 : i32, i32
  }
  func.func @transform_2(%arg0: i32, %arg1: i32) -> (i32, i32) {
    %c0_i32 = arith.constant 0 : i32
    return %arg0, %arg1 : i32, i32
  }
}

</mosaic_0001>

<bundles_post_ra>
// kernel: tpu_custom_call.1
= control target key start
LH: loop header
LB: loop body
LE: loop exit
PB: predicated region body
PF: predicated region fallthrough
CT: control target
= control target key end

     0   :  { %7 = vsyncpa [#allocation3], 0  ;;  %s210_s0 = inlined_call_operand.hbm [shape: f32[8,128], index: 0, kind: input, shape index: {}]   ;;  %s211_s1 = inlined_call_operand.hbm [shape: f32[128,128], index: 1, kind: input, shape index: {}]   ;;  %s212_s2 = inlined_call_operand.hbm [shape: f32[8,128], index: 2, kind: output, shape index: {}]  }
   0x1   :  { %8 = vsyncpa [#allocation6], 0 }
   0x2   :  { %9 = vsyncpa [#allocation4], 0  ;;  %s15_s11 = sshll.u32 %s210_s0, 4  ;;  %s181_s12 = smov [#allocation2]   ;;  %s16_s11 = int_to_ptr.hbm [resolvable:$true] %s15_s11 }
   0x3   :  { %s17_s13 = sshll.u32 %s181_s12, 4  ;;  %s25_s16 = sshll.u32 %s211_s1, 4  ;;  %s18_s13 = int_to_ptr.vmem [resolvable:$true] %s17_s13  ;;  %s26_s16 = int_to_ptr.hbm [resolvable:$true] %s25_s16 }
   0x4   :  { %20 = dma.hbm_to_vmem [thread:$0]  %s16_s11, 128, %s18_s13, [#allocation3]  }
   0x5   :  { %s182_s17 = smov [#allocation5]   ;;  %s183_s19 = smov 128  }
   0x6   :  { %s27_s18 = sshll.u32 %s182_s17, 4  ;;  %s184_s20 = smov 8   ;;  %s28_s18 = int_to_ptr.vmem [resolvable:$true] %s27_s18 }
   0x7   :  { %33 = dma.hbm_to_vmem [thread:$0]  %s26_s16, 2048, %s28_s18, [#allocation6], %s183_s19, %s183_s19, %s184_s20  }
   0x8   :  { %175 = dma.done.wait [#allocation3], 128  }
   0x9   :  { %176 = vsyncadd [#allocation3], 4294967168 }
   0xa   :  { %177 = dma.done.wait [#allocation6], 2048  }
   0xb   :  { %178 = vsyncadd [#allocation6], 4294965248  ;;  %v58_v0 = vld [vmem:[#allocation5 + $0x78] sm:$0xff]  ;;  %v57_v1 = vld [vmem:[#allocation5 + $0x70] sm:$0xff]  ;;  %s185_s0 = smov [#allocation7]   ;;  %s87_s23 = sshll.u32 %s212_s2, 4  ;;  %s88_s23 = int_to_ptr.hbm [resolvable:$true] %s87_s23 }
   0xc   :  { %59 = vmatpush.msra.mxu0 %v58_v0  ;;  %v56_v2 = vld [vmem:[#allocation5 + $0x68] sm:$0xff]  ;;  %v55_v3 = vld [vmem:[#allocation5 + $0x60] sm:$0xff]  ;;  %v54_v4 = vld [vmem:[#allocation5 + $0x58] sm:$0xff]  ;;  %s85_s1 = sshll.u32 %s185_s0, 4  ;;  %s86_s1 = int_to_ptr.vmem [resolvable:$true] %s85_s1 }
   0xd   :  { %v53_v5 = vld [vmem:[#allocation5 + $0x50] sm:$0xff]  ;;  %v52_v6 = vld [vmem:[#allocation5 + $0x48] sm:$0xff]  ;;  %v51_v7 = vld [vmem:[#allocation5 + $0x40] sm:$0xff] }
   0xe   :  { %60 = vmatpush.msra.mxu0 %v57_v1  ;;  %v50_v8 = vld [vmem:[#allocation5 + $0x38] sm:$0xff]  ;;  %v49_v9 = vld [vmem:[#allocation5 + $0x30] sm:$0xff]  ;;  %v48_v10 = vld [vmem:[#allocation5 + $0x28] sm:$0xff] }
   0xf   :  { %v47_v11 = vld [vmem:[#allocation5 + $0x20] sm:$0xff]  ;;  %v46_v12 = vld [vmem:[#allocation5 + $0x18] sm:$0xff]  ;;  %v45_v13 = vld [vmem:[#allocation5 + $0x10] sm:$0xff] }
  0x10   :  { %61 = vmatpush.msra.mxu0 %v56_v2  ;;  %v44_v14 = vld [vmem:[#allocation5 + $0x8] sm:$0xff]  ;;  %v43_v15 = vld [vmem:[#allocation5] sm:$0xff]  ;;  %v42_v16 = vld [vmem:[#allocation2] sm:$0xff] }
  0x12   :  { %62 = vmatpush.msra.mxu0 %v55_v3 }
  0x14   :  { %63 = vmatpush.msra.mxu0 %v54_v4 }
  0x16   :  { %64 = vmatpush.msra.mxu0 %v53_v5 }
  0x18   :  { %65 = vmatpush.msra.mxu0 %v52_v6 }
  0x1a   :  { %66 = vmatpush.msra.mxu0 %v51_v7 }
  0x1c   :  { %67 = vmatpush.msra.mxu0 %v50_v8 }
  0x1e   :  { %68 = vmatpush.msra.mxu0 %v49_v9 }
  0x20   :  { %69 = vmatpush.msra.mxu0 %v48_v10 }
  0x22   :  { %70 = vmatpush.msra.mxu0 %v47_v11 }
  0x24   :  { %71 = vmatpush.msra.mxu0 %v46_v12 }
  0x26   :  { %72 = vmatpush.msra.mxu0 %v45_v13 }
  0x28   :  { %73 = vmatpush.msra.mxu0 %v44_v14 }
  0x2a   :  { %74 = vmatpush.msra.mxu0 %v43_v15 }
  0x2b   :  { %75 = vmatmul.f32.vlgmr.msra.gmra.mxu0 %v42_v16 }
  0xa8   :  { %v76_v17 = vpop.f32.mrf.mxu0 }
  0xa9   :  { %79 = vst [vmem:[#allocation7] sm:$0xff] %v76_v17 }
  0xaa   :  { %90 = dma.vmem_to_hbm [thread:$0]  %s86_s1, 128, %s88_s23, [#allocation4]  }
  0xab   :  { %179 = dma.done.wait [#allocation4], 128  }
  0xac   :  { %180 = vsyncadd [#allocation4], 4294967168 }
  0xad   :  { %95 = vsyncpa [#allocation3], 1 }
  0xae   :  { %96 = vsyncpa [#allocation6], 1 }
  0xaf   :  { %97 = vsyncpa [#allocation4], 1 }

</bundles_post_ra>
